<compile_context>
chip_gen: v7x
topology: tpu7x:2x2x1
jax: 0.10.0
libtpu: 0.0.40
codegen_flags: <defaults>
</compile_context>

<pallas_src>
import jax
import jax.numpy as jnp
from jax.experimental import pallas as pl
from jax.experimental.pallas import tpu as pltpu


def _make_conv_kernel(kh, kw, c_in, wp, lout, kc, kc_pad, compute_dtype):
    def kernel(x_ref, w_ref, b_ref, o_ref, slab_ref):
        # x_ref : (C_in, FL)   flat padded image (compute_dtype)   [per-image block]
        # w_ref : (C_out, KCp) flattened weights (compute_dtype)   [grid-resident]
        # b_ref : (C_out, 1)   bias (f32)                          [grid-resident]
        # o_ref : (C_out, L)   flat output incl. kw-1 junk cols/row (f32)
        # slab  : (KCp, L)     on-chip tap slab (VMEM scratch)
        for ki in range(kh):
            for kj in range(kw):
                shift = ki * wp + kj                 # tap offset on the flat axis
                row = (ki * kw + kj) * c_in          # tap-major / channel-minor
                slab_ref[row:row + c_in, :] = x_ref[:, shift:shift + lout]
        if kc_pad > kc:
            # zero the KC-padding rows every step (scratch is per-core and
            # otherwise uninitialized -> NaN * 0 hazard)
            slab_ref[kc:kc_pad, :] = jnp.zeros((kc_pad - kc, lout), compute_dtype)
        acc = jnp.dot(w_ref[...], slab_ref[...],
                      preferred_element_type=jnp.float32)   # single fused MXU matmul
        o_ref[...] = acc + b_ref[...]                       # f32 epilogue, one broadcast
    return kernel


def _vmem_limit_bytes(block_bytes):
    """Per-generation scoped-VMEM budget (v7x has only 64 MiB physical)."""
    try:
        cap = int(pltpu.get_tpu_info().vmem_capacity_bytes)
    except Exception:
        cap = 64 << 20                       # conservative: v7x physical capacity
    want = max(16 << 20, 4 * int(block_bytes))   # headroom for Mosaic-internal scratch
    return int(min(want, cap // 2))


def conv_model_forward(inp, others, bias=None, *, compute_dtype=jnp.bfloat16):
    """Equivalent of ConvModel.forward: conv2d(input, others, bias, padding=1)."""
    n, c_in, h, w = inp.shape
    c_out, c_in_w, kh, kw = others.shape
    assert c_in_w == c_in
    pad = 1  # module hard-codes padding=1

    oh = h + 2 * pad - kh + 1
    ow = w + 2 * pad - kw + 1
    wp = w + 2 * pad                 # padded row length = flat row stride
    lout = oh * wp                   # flat output length (incl. kw-1 junk cols per row)
    kc = kh * kw * c_in

    # Bottom-pad enough extra zero rows that every tap's shifted lane-slice of
    # the flat image stays in bounds: FL >= lout + (kh-1)*wp + (kw-1).
    need = lout + (kh - 1) * wp + (kw - 1)
    hp = max(pl.cdiv(need, wp), h + 2 * pad)
    fl = hp * wp

    xp = jnp.pad(inp.astype(compute_dtype),
                 ((0, 0), (0, 0), (pad, hp - h - pad), (pad, pad)))
    xflat = xp.reshape(n, c_in, fl)          # free reshape, no replication

    # Pad the contraction dim to the sublane packing so the MXU operand has no
    # masked rows (padded slab rows zeroed in-kernel, weight columns zero-padded).
    pack = 2 if jnp.dtype(compute_dtype).itemsize == 2 else 1
    kc_pad = ((kc + 8 * pack - 1) // (8 * pack)) * (8 * pack)

    # weight OIHW -> (C_out, KC), tap-major / channel-minor (matches slab order)
    wk = jnp.transpose(others, (0, 2, 3, 1)).reshape(c_out, kc).astype(compute_dtype)
    if kc_pad > kc:
        wk = jnp.pad(wk, ((0, 0), (0, kc_pad - kc)))
    b = (jnp.zeros((c_out, 1), jnp.float32) if bias is None
         else bias.astype(jnp.float32).reshape(c_out, 1))

    # TODO(synk): for large C_in*H*W the whole padded image no longer fits in
    # VMEM; row-band tile the flat axis with manual halo DMA
    # (memory_space=pl.ANY + pltpu.make_async_copy) instead of one full block.
    itm = jnp.dtype(compute_dtype).itemsize
    block_bytes = (2 * c_in * fl * itm            # double-buffered input block
                   + 2 * c_out * lout * 4         # double-buffered output block
                   + kc_pad * lout * itm          # tap-slab scratch
                   + c_out * kc_pad * itm + c_out * 4)
    vmem_limit = _vmem_limit_bytes(block_bytes)

    kernel = _make_conv_kernel(kh, kw, c_in, wp, lout, kc, kc_pad, compute_dtype)

    out_flat = pl.pallas_call(
        kernel,
        out_shape=jax.ShapeDtypeStruct((n, c_out, lout), jnp.float32),
        grid_spec=pltpu.PrefetchScalarGridSpec(
            num_scalar_prefetch=0,
            grid=(n,),   # batch = parallel axis -> 2 steps feed both v7x TCs
            in_specs=[
                pl.BlockSpec((None, c_in, fl), lambda i: (i, 0, 0)),   # one flat image
                pl.BlockSpec((c_out, kc_pad), lambda i: (0, 0)),       # resident weights
                pl.BlockSpec((c_out, 1), lambda i: (0, 0)),            # resident bias
            ],
            out_specs=pl.BlockSpec((None, c_out, lout), lambda i: (i, 0, 0)),
            scratch_shapes=[pltpu.VMEM((kc_pad, lout), compute_dtype)],
        ),
        compiler_params=pltpu.CompilerParams(
            dimension_semantics=("parallel",),
            vmem_limit_bytes=vmem_limit,
        ),
    )(xflat, wk, b)

    # (N, C_out, OH*Wp) -> (N, C_out, OH, Wp) -> drop the kw-1 junk columns
    return out_flat.reshape(n, c_out, oh, wp)[:, :, :, :ow]


if __name__ == "__main__":
    key = jax.random.PRNGKey(0)
    k1, k2, k3 = jax.random.split(key, 3)

    # small shapes consistent with the module's conv2d forward
    N, C_IN, H, W = 2, 4, 16, 16
    C_OUT, KH, KW = 8, 3, 3

    x = jax.random.normal(k1, (N, C_IN, H, W), jnp.float32)
    weight = jax.random.normal(k2, (C_OUT, C_IN, KH, KW), jnp.float32) * 0.1
    bias = jax.random.normal(k3, (C_OUT,), jnp.float32) * 0.1

    out = conv_model_forward(x, weight, bias=bias)
    out = jax.block_until_ready(out)
    assert out.shape == (N, C_OUT, H, W), out.shape

    # Reference: XLA conv on the same bf16-quantized operands with exact f32
    # accumulation (matches the kernel's bf16-stream / f32-accumulate path).
    xq = x.astype(jnp.bfloat16).astype(jnp.float32)
    wq = weight.astype(jnp.bfloat16).astype(jnp.float32)
    ref = jax.lax.conv_general_dilated(
        xq, wq, window_strides=(1, 1), padding=((1, 1), (1, 1)),
        dimension_numbers=("NCHW", "OIHW", "NCHW"),
        precision=jax.lax.Precision.HIGHEST,
    ) + bias.reshape(1, C_OUT, 1, 1)
    ref = jax.block_until_ready(ref)
    err = float(jnp.max(jnp.abs(out - ref)))
    assert jnp.allclose(out, ref, atol=1e-3, rtol=1e-3), err

    print("KERNEL_OK")
</pallas_src>

<mosaic_0001>
module attributes {stable_mosaic.version = 11 : i64} {
  func.func @kernel(%arg0: i32, %arg1: memref<1x4x342xbf16, #tpu.memory_space<vmem>>, %arg2: memref<8x48xbf16, #tpu.memory_space<vmem>>, %arg3: memref<8x1xf32, #tpu.memory_space<vmem>>, %arg4: memref<1x8x288xf32, #tpu.memory_space<vmem>>, %arg5: memref<48x288xbf16, #tpu.memory_space<vmem>>) attributes {dimension_semantics = [#tpu.dimension_semantics<parallel>], iteration_bounds = array<i64: 2>, scalar_prefetch = 0 : i64, scratch_operands = 1 : i64, tpu.core_type = #tpu.core_type<tc>, window_params = [{transform_indices = @transform_0, window_bounds = array<i64: 1, 4, 342>}, {pipeline_mode = #tpu.pipeline_mode<synchronous>, transform_indices = @transform_1, window_bounds = array<i64: 8, 48>}, {pipeline_mode = #tpu.pipeline_mode<synchronous>, transform_indices = @transform_2, window_bounds = array<i64: 8, 1>}, {transform_indices = @transform_3, window_bounds = array<i64: 1, 8, 288>}]} {
    %c0 = arith.constant 0 : index
    %c0_0 = arith.constant 0 : index
    %c0_1 = arith.constant 0 : index
    %0 = vector.load %arg1[%c0, %c0_0, %c0_1] : memref<1x4x342xbf16, #tpu.memory_space<vmem>>, vector<1x4x288xbf16>
    %1 = vector.shape_cast %0 : vector<1x4x288xbf16> to vector<4x288xbf16>
    %c0_2 = arith.constant 0 : index
    %c0_3 = arith.constant 0 : index
    %2 = vector.load %arg5[%c0_2, %c0_3] : memref<48x288xbf16, #tpu.memory_space<vmem>>, vector<4x288xbf16>
    tpu.vector_store %arg5[%c0_2, %c0_3], %1 {strides = array<i32>} : memref<48x288xbf16, #tpu.memory_space<vmem>>, vector<4x288xbf16>,
    %c0_4 = arith.constant 0 : index
    %c0_5 = arith.constant 0 : index
    %c1 = arith.constant 1 : index
    %3 = vector.load %arg1[%c0_4, %c0_5, %c1] : memref<1x4x342xbf16, #tpu.memory_space<vmem>>, vector<1x4x288xbf16>
    %4 = vector.shape_cast %3 : vector<1x4x288xbf16> to vector<4x288xbf16>
    %c4 = arith.constant 4 : index
    %c0_6 = arith.constant 0 : index
    %5 = vector.load %arg5[%c4, %c0_6] : memref<48x288xbf16, #tpu.memory_space<vmem>>, vector<4x288xbf16>
    tpu.vector_store %arg5[%c4, %c0_6], %4 {strides = array<i32>} : memref<48x288xbf16, #tpu.memory_space<vmem>>, vector<4x288xbf16>,
    %c0_7 = arith.constant 0 : index
    %c0_8 = arith.constant 0 : index
    %c2 = arith.constant 2 : index
    %6 = vector.load %arg1[%c0_7, %c0_8, %c2] : memref<1x4x342xbf16, #tpu.memory_space<vmem>>, vector<1x4x288xbf16>
    %7 = vector.shape_cast %6 : vector<1x4x288xbf16> to vector<4x288xbf16>
    %c8 = arith.constant 8 : index
    %c0_9 = arith.constant 0 : index
    %8 = vector.load %arg5[%c8, %c0_9] : memref<48x288xbf16, #tpu.memory_space<vmem>>, vector<4x288xbf16>
    tpu.vector_store %arg5[%c8, %c0_9], %7 {strides = array<i32>} : memref<48x288xbf16, #tpu.memory_space<vmem>>, vector<4x288xbf16>,
    %c0_10 = arith.constant 0 : index
    %c0_11 = arith.constant 0 : index
    %c18 = arith.constant 18 : index
    %9 = vector.load %arg1[%c0_10, %c0_11, %c18] : memref<1x4x342xbf16, #tpu.memory_space<vmem>>, vector<1x4x288xbf16>
    %10 = vector.shape_cast %9 : vector<1x4x288xbf16> to vector<4x288xbf16>
    %c12 = arith.constant 12 : index
    %c0_12 = arith.constant 0 : index
    %11 = vector.load %arg5[%c12, %c0_12] : memref<48x288xbf16, #tpu.memory_space<vmem>>, vector<4x288xbf16>
    tpu.vector_store %arg5[%c12, %c0_12], %10 {strides = array<i32>} : memref<48x288xbf16, #tpu.memory_space<vmem>>, vector<4x288xbf16>,
    %c0_13 = arith.constant 0 : index
    %c0_14 = arith.constant 0 : index
    %c19 = arith.constant 19 : index
    %12 = vector.load %arg1[%c0_13, %c0_14, %c19] : memref<1x4x342xbf16, #tpu.memory_space<vmem>>, vector<1x4x288xbf16>
    %13 = vector.shape_cast %12 : vector<1x4x288xbf16> to vector<4x288xbf16>
    %c16 = arith.constant 16 : index
    %c0_15 = arith.constant 0 : index
    %14 = vector.load %arg5[%c16, %c0_15] : memref<48x288xbf16, #tpu.memory_space<vmem>>, vector<4x288xbf16>
    tpu.vector_store %arg5[%c16, %c0_15], %13 {strides = array<i32>} : memref<48x288xbf16, #tpu.memory_space<vmem>>, vector<4x288xbf16>,
    %c0_16 = arith.constant 0 : index
    %c0_17 = arith.constant 0 : index
    %c20 = arith.constant 20 : index
    %15 = vector.load %arg1[%c0_16, %c0_17, %c20] : memref<1x4x342xbf16, #tpu.memory_space<vmem>>, vector<1x4x288xbf16>
    %16 = vector.shape_cast %15 : vector<1x4x288xbf16> to vector<4x288xbf16>
    %c20_18 = arith.constant 20 : index
    %c0_19 = arith.constant 0 : index
    %17 = vector.load %arg5[%c20_18, %c0_19] : memref<48x288xbf16, #tpu.memory_space<vmem>>, vector<4x288xbf16>
    tpu.vector_store %arg5[%c20_18, %c0_19], %16 {strides = array<i32>} : memref<48x288xbf16, #tpu.memory_space<vmem>>, vector<4x288xbf16>,
    %c0_20 = arith.constant 0 : index
    %c0_21 = arith.constant 0 : index
    %c36 = arith.constant 36 : index
    %18 = vector.load %arg1[%c0_20, %c0_21, %c36] : memref<1x4x342xbf16, #tpu.memory_space<vmem>>, vector<1x4x288xbf16>
    %19 = vector.shape_cast %18 : vector<1x4x288xbf16> to vector<4x288xbf16>
    %c24 = arith.constant 24 : index
    %c0_22 = arith.constant 0 : index
    %20 = vector.load %arg5[%c24, %c0_22] : memref<48x288xbf16, #tpu.memory_space<vmem>>, vector<4x288xbf16>
    tpu.vector_store %arg5[%c24, %c0_22], %19 {strides = array<i32>} : memref<48x288xbf16, #tpu.memory_space<vmem>>, vector<4x288xbf16>,
    %c0_23 = arith.constant 0 : index
    %c0_24 = arith.constant 0 : index
    %c37 = arith.constant 37 : index
    %21 = vector.load %arg1[%c0_23, %c0_24, %c37] : memref<1x4x342xbf16, #tpu.memory_space<vmem>>, vector<1x4x288xbf16>
    %22 = vector.shape_cast %21 : vector<1x4x288xbf16> to vector<4x288xbf16>
    %c28 = arith.constant 28 : index
    %c0_25 = arith.constant 0 : index
    %23 = vector.load %arg5[%c28, %c0_25] : memref<48x288xbf16, #tpu.memory_space<vmem>>, vector<4x288xbf16>
    tpu.vector_store %arg5[%c28, %c0_25], %22 {strides = array<i32>} : memref<48x288xbf16, #tpu.memory_space<vmem>>, vector<4x288xbf16>,
    %c0_26 = arith.constant 0 : index
    %c0_27 = arith.constant 0 : index
    %c38 = arith.constant 38 : index
    %24 = vector.load %arg1[%c0_26, %c0_27, %c38] : memref<1x4x342xbf16, #tpu.memory_space<vmem>>, vector<1x4x288xbf16>
    %25 = vector.shape_cast %24 : vector<1x4x288xbf16> to vector<4x288xbf16>
    %c32 = arith.constant 32 : index
    %c0_28 = arith.constant 0 : index
    %26 = vector.load %arg5[%c32, %c0_28] : memref<48x288xbf16, #tpu.memory_space<vmem>>, vector<4x288xbf16>
    tpu.vector_store %arg5[%c32, %c0_28], %25 {strides = array<i32>} : memref<48x288xbf16, #tpu.memory_space<vmem>>, vector<4x288xbf16>,
    %cst = arith.constant 0.000000e+00 : bf16
    %27 = vector.broadcast %cst : bf16 to vector<12x288xbf16>
    %c36_29 = arith.constant 36 : index
    %c0_30 = arith.constant 0 : index
    %28 = vector.load %arg5[%c36_29, %c0_30] : memref<48x288xbf16, #tpu.memory_space<vmem>>, vector<12x288xbf16>
    tpu.vector_store %arg5[%c36_29, %c0_30], %27 {strides = array<i32>} : memref<48x288xbf16, #tpu.memory_space<vmem>>, vector<12x288xbf16>,
    %c0_31 = arith.constant 0 : index
    %c0_32 = arith.constant 0 : index
    %29 = vector.load %arg2[%c0_31, %c0_32] : memref<8x48xbf16, #tpu.memory_space<vmem>>, vector<8x48xbf16>
    %c0_33 = arith.constant 0 : index
    %c0_34 = arith.constant 0 : index
    %30 = vector.load %arg5[%c0_33, %c0_34] : memref<48x288xbf16, #tpu.memory_space<vmem>>, vector<48x288xbf16>
    %cst_35 = arith.constant dense<0.000000e+00> : vector<8x288xf32>
    %31 = tpu.matmul %29, %30, %cst_35 {dimension_numbers = #tpu.dot_dimension_numbers<[1], [0], [0], [1], [0, 0, 1, 1], [], []>} : vector<8x48xbf16>, vector<48x288xbf16>, vector<8x288xf32> -> vector<8x288xf32>
    %c0_36 = arith.constant 0 : index
    %c0_37 = arith.constant 0 : index
    %32 = vector.load %arg3[%c0_36, %c0_37] : memref<8x1xf32, #tpu.memory_space<vmem>>, vector<8x1xf32>
    %33 = vector.broadcast %32 : vector<8x1xf32> to vector<8x288xf32>
    %34 = arith.addf %31, %33 : vector<8x288xf32>
    %c0_38 = arith.constant 0 : index
    %c0_39 = arith.constant 0 : index
    %c0_40 = arith.constant 0 : index
    %35 = vector.load %arg4[%c0_38, %c0_39, %c0_40] : memref<1x8x288xf32, #tpu.memory_space<vmem>>, vector<1x8x288xf32>
    %36 = vector.shape_cast %35 : vector<1x8x288xf32> to vector<8x288xf32>
    %37 = vector.shape_cast %34 : vector<8x288xf32> to vector<1x8x288xf32>
    tpu.vector_store %arg4[%c0_38, %c0_39, %c0_40], %37 {strides = array<i32>} : memref<1x8x288xf32, #tpu.memory_space<vmem>>, vector<1x8x288xf32>,
    return
  }
  func.func @transform_0(%arg0: i32) -> (i32, i32, i32) {
    %c0_i32 = arith.constant 0 : i32
    %c0_i32_0 = arith.constant 0 : i32
    %c0_i32_1 = arith.constant 0 : i32
    return %arg0, %c0_i32, %c0_i32_0 : i32, i32, i32
  }
  func.func @transform_1(%arg0: i32) -> (i32, i32) {
    %c0_i32 = arith.constant 0 : i32
    %c0_i32_0 = arith.constant 0 : i32
    %c0_i32_1 = arith.constant 0 : i32
    return %c0_i32, %c0_i32_0 : i32, i32
  }
  func.func @transform_2(%arg0: i32) -> (i32, i32) {
    %c0_i32 = arith.constant 0 : i32
    %c0_i32_0 = arith.constant 0 : i32
    %c0_i32_1 = arith.constant 0 : i32
    return %c0_i32, %c0_i32_0 : i32, i32
  }
  func.func @transform_3(%arg0: i32) -> (i32, i32, i32) {
    %c0_i32 = arith.constant 0 : i32
    %c0_i32_0 = arith.constant 0 : i32
    %c0_i32_1 = arith.constant 0 : i32
    return %arg0, %c0_i32, %c0_i32_0 : i32, i32, i32
  }
}

</mosaic_0001>

<bundles_post_ra>
// kernel: tpu_custom_call.1
= control target key start
LH: loop header
LB: loop body
LE: loop exit
PB: predicated region body
PF: predicated region fallthrough
CT: control target
= control target key end

     0   :  { %8 = vsyncpa [#allocation4], 0  ;;  %s1136_s0 = inlined_call_operand.hbm [shape: bf16[2,4,342], index: 0, kind: input, shape index: {}]   ;;  %s1137_s1 = inlined_call_operand.vmem [shape: bf16[8,48], index: 1, kind: input, shape index: {}]   ;;  %s1138_s2 = inlined_call_operand.vmem [shape: f32[8,1], index: 2, kind: input, shape index: {}]   ;;  %s1139_s3 = inlined_call_operand.hbm [shape: f32[2,8,288], index: 3, kind: output, shape index: {}]  }
   0x1   :  { %10 = vsyncpa [#allocation4 + $0x1], 0 }
   0x2   :  { %11 = vsyncpa [#allocation5], 0 }
   0x3   :  { %13 = vsyncpa [#allocation5 + $0x1], 0  ;;  %s908_s12 = smov 0   ;;  %s910_s13 = smov 0  }
   0x4   :  { %s912_s14 = smov 0   ;;  %s914_s15 = smov 0  }
   0x5 LB: > { %s929_s16 = sadd.s32 4294967295, %s872_s15   ;;  %s678_s17 = sadd.s32 4294967294, %s872_s15   ;;  %s872_s15 = sphi %s914_s15, %s1153_s15   ;;  %s868_s14 = sphi %s912_s14, %s1152_s14   ;;  %s864_s13 = sphi %s910_s13, %s1151_s13   ;;  %s860_s12 = sphi %s908_s12, %s1150_s12  }
   0x6   : > { %s933_s18 = sadd.s32 1, %s872_s15   ;;  %s26_s19 = sadd.s32 1, %s868_s14 }
   0x7   : > { %s23_s20 = ssub.s32 %s872_s15, %s933_s18  ;;  %p33_p0 = scmp.ne.s32.totalorder %s868_s14, %s864_s13 }
   0x8   : > { %p24_p1 = scmp.eq.s32.totalorder %s23_s20, 0  ;;  %p34_p2 = scmp.eq.s32.totalorder %s872_s15, 0 }
   0x9   : > { %p39_p3 = scmp.ne.s32.totalorder %s864_s13, %s860_s12  ;;  %p40_p4 = scmp.eq.s32.totalorder %s929_s16, 0 }
   0xa   : > { %s945_s21 = scalar_select %p24_p1, %s868_s14, %s26_s19  }
   0xb   : > { %p35_p5 = por %p34_p2, %p33_p0  ;;  %p947_p6 = por %p40_p4, %p39_p3 }
   0xc   : > { %p105_p7 = scmp.eq.s32.totalorder %s929_s16, 1  ;;  %p111_p8 = scmp.eq.s32.totalorder %s678_s17, 1 }
   0xd   : > { %p720_p10 = scmp.lt.s32.totalorder %s872_s15, 2  ;;  %s137_s25 = sand.u32 1, %s868_s14  }
   0xe   : > { %p954_p11 = por %p105_p7, %p33_p0  ;;  %p958_p12 = por %p111_p8, %p39_p3 }
   0xf   : > { %s704_s26 = smul.u32 96, %s872_s15  ;;  %p969_p13 = pnand %p720_p10, %p35_p5 }
  0x10   : > { %s1142_s23 = scalar_select %p954_p11, 1, 0 }
  0x11   : > { %s1143_s24 = scalar_select %p958_p12, 1, 0 }
  0x12   : > { %s703_s27 = smul.u32 6, %s137_s25  ;;  %s967_s30 = scalar_lea.hbm %s1136_s0, %s704_s26 }
  0x13   : > { %s138_s7 = scalar_lea.sflag [#allocation4], %s137_s25  ;;  %s776_s8 = scalar_lea.hbm %s967_s30, 96 }
  0x14   : > { %s141_s5 = scalar_lea.vmem [#allocation3], %s703_s27  ;;  %p777_p2 = scmp.ne.s32.totalorder %s967_s30, %s776_s8 }
  0x15   : > { %s149_s6 = sshll.u32 %s141_s5, 4  ;;  %p778_p3 = pneg %p969_p13  ;;  %s974_s6 = int_to_ptr.vmem [resolvable:$true] %s149_s6 }
  0x16   : > { %s781_s11 = scalar_lea.hbm %s1136_s0, 192  ;;  %p782_p7 = scmp.lt.u32.totalorder %s967_s30, %s1136_s0 }
  0x17   : > { %p779_p4 = pnand %p778_p3, %p777_p2  ;;  %p783_p8 = scmp.lt.u32.totalorder %s781_s11, %s776_s8 }
  0x18   : > { %p785_p9 = scmp.lt.u32.totalorder %s776_s8, %s967_s30 }
  0x19   : > { %p780_p5 = pneg %p779_p4  ;;  %p784_p10 = por %p783_p8, %p782_p7 }
  0x1b   : > { %p786_p0 = por %p785_p9, %p784_p10 }
  0x1d   : > { %p787_p1 = pnand %p786_p0, %p780_p5 }
  0x1f   : > { %790 = shalt.err (!%p787_p1)
}
  0x20   : > { %s791_s20 = scalar_lea.vmem %s974_s6, 96  ;;  %s874_s25 = smov [#allocation3]  }
  0x21   : > { %p792_p2 = scmp.ne.s32.totalorder %s974_s6, %s791_s20  ;;  %s796_s26 = sshll.u32 %s874_s25, 4  ;;  %s797_s26 = int_to_ptr.vmem [resolvable:$false] %s796_s26 }
  0x22   : > { %s798_s27 = scalar_lea.vmem %s797_s26, 192  ;;  %p799_p11 = scmp.lt.s32.totalorder %s974_s6, %s797_s26 }
  0x23   : > { %p794_p4 = pnand %p792_p2, %p778_p3  ;;  %p800_p7 = scmp.lt.s32.totalorder %s798_s27, %s791_s20 }
  0x25   : > { %p795_p12 = pneg %p794_p4  ;;  %p801_p8 = por %p800_p7, %p799_p11 }
  0x27   : > { %p802_p9 = pnand %p801_p8, %p795_p12 }
  0x29   : > { %805 = shalt.err (!%p802_p9)
}
  0x2a   : > { %715 = dma.hbm_to_vmem [thread:$0]  (!%p969_p13), %s967_s30, 96, %s974_s6, %s138_s7  }
  0x2b   : > { %p1145_p0 = scmp.lt.s32.totalorder %s872_s15, 3  ;;  %p1146_p1 = scmp.ge.s32.totalorder %s872_s15, 1 }
  0x2d   : > { %p155_p3 = pnand %p1146_p1, %p1145_p0 }
  0x2e   : > { %s1007_s28 = sand.u32 (!%p155_p3), 1, %s864_s13  }
  0x2f   : > { %158 = sbr.rel (%p155_p3) target bundleno = 465 (0x1d1), region = 32  ;;  %s161_s5 = scalar_lea.sflag (!%p155_p3), [#allocation4], %s1007_s28 }
  0x30   : > { %s705_s29 = smul.u32 (!%p155_p3), 6, %s1007_s28 }
  0x32   : > { %s1011_s8 = scalar_lea.vmem (!%p155_p3), [#allocation3], %s705_s29 }
  0x36   : > { %851 = dma.done.wait (%p947_p6), %s161_s5, 96  }
  0x37   : > { %853 = vsyncadd (%p947_p6), %s161_s5, 4294967200  ;;  %v194_v0 = vlaneseq  ;;  %v875_v1 = vmov 1983009808   ;;  %v247_v6 = vld [vmem:[%s1011_s8] sm:$0x3f]  ;;  %s876_s22 = smov 126  }
  0x38   : > { %v192_v2 = vunpack.c.l.s4 %v875_v1  ;;  %v213_v7 = vld [vmem:[%s1011_s8] sm:$0x3f]  ;;  %v249_v14 = vcombine.high %v247_v6, %v247_v6  ;;  %s877_s30 = smov 127   ;;  %s878_s4 = smov 110   ;;  %v879_v23 = vmov 0.0   ;;  %vm211_vm0 = vcmask 254976  }
  0x39   : > { %v195_v3 = vshrl.u32 %v194_v0, 7  ;;  %v282_v8 = vld [vmem:[%s1011_s8] sm:$0x3f]  ;;  %v215_v15 = vcombine.low %v213_v7, %v213_v7  ;;  %693 = vmatprep.subr.bf16.mxu1 %v879_v23  ;;  %s880_s6 = smov 109   ;;  %s881_s7 = smov 108   ;;  %vm486_vm1 = vcmask 261122  }
  0x3a   : > { %v193_v4 = vunpack.c.0.s8 %v192_v2  ;;  %v284_v12 = vcombine.low %v282_v8, %v282_v8  ;;  %v188_v13 = vld [vmem:[%s1011_s8] sm:$0x3f]  ;;  %s882_s9 = smov 92   ;;  %s883_s10 = smov 91   ;;  %v884_v50 = vmov 0   ;;  %vm886_vm2 = vmmov 0  }
  0x3b   : > { %683 = vst.sshfl [vmem:[#allocation2] sm:$0x3 pattern:$0x76325410] %v188_v13  ;;  %v317_v21 = vld [vmem:[%s1011_s8] sm:$0x3f]  ;;  %v190_v26 = vcombine.high %v188_v13, %v188_v13  ;;  %540 = vmatprep.mubr.bf16.mxu0 %v884_v50  ;;  %766 = vset.pattern.permute.xlu0 %v884_v50 }
  0x3c   : > { %v1017_v5 = vsub.s32 %v193_v4, %v195_v3  ;;  %v350_v22 = vld [vmem:[%s1011_s8] sm:$0x3f]  ;;  %v319_v35 = vcombine.high %v317_v21, %v317_v21  ;;  %487 = vst.msk [vmem:[#allocation2 + $0x40] sm:$0xfc] %vm486_vm1, %v884_v50  ;;  %484 = vst [vmem:[#allocation2 + $0x30] sm:$0xfc] %v884_v50  ;;  %699 = vmatprep.mubr.msk.bf16.mxu1 %vm886_vm2, %v879_v23 }
  0x3d   : > { %v352_v25 = vcombine.low %v350_v22, %v350_v22  ;;  %v383_v36 = vld [vmem:[%s1011_s8] sm:$0x3f]  ;;  %485 = vst [vmem:[#allocation2 + $0x38] sm:$0xfc] %v884_v50  ;;  %s885_s11 = smov 90   ;;  %v498_v57 = vld [vmem:[%s1138_s2] sm:$0xff] }
  0x3e   : > { %v256_v9 = vrot.slane %v247_v6, %v1017_v5  ;;  %v229_v10 = vrot.slane %v213_v7, %v1017_v5  ;;  %v298_v11 = vrot.slane %v282_v8, %v1017_v5  ;;  %v291_v17 = vrot.slane %v284_v12, %v1017_v5  ;;  %v417_v40 = vld [vmem:[%s1011_s8] sm:$0x3f]  ;;  %s706_s26 = smul.u32 24, %s1007_s28  ;;  %p1147_p11 = scmp.ne.s32.totalorder %s1142_s23, 0 }
  0x3f   : > { %v222_v19 = vrot.slane %v215_v15, %v1017_v5  ;;  %v263_v20 = vrot.slane %v249_v14, %v1017_v5  ;;  %v326_v24 = vrot.slane %v317_v21, %v1017_v5  ;;  %v197_v29 = vrot.slane %v188_v13, %v1017_v5  ;;  %v451_v49 = vld [vmem:[%s1011_s8] sm:$0x3f]  ;;  %s707_s27 = smul.u32 384, %s929_s16  ;;  %s594_s16 = scalar_lea.sflag [#allocation5], %s1007_s28 }
  0x40   : > { %268 = vrot.lane.b32.xlu1 %v256_v9, %s876_s22  ;;  %235 = vrot.lane.b32.xlu0 %v229_v10, %s877_s30  ;;  %v300_v16 = vcombine.low %v298_v11, %v298_v11  ;;  %v264_v18 = vcombine.low %v256_v9, %v256_v9  ;;  %v204_v30 = vrot.slane %v190_v26, %v1017_v5  ;;  %vm245_vm3 = vcmask 257026   ;;  %s186_s29 = scalar_lea.vmem [#allocation6], %s706_s26 }
  0x41   : > { %v265_v27 = vcombine.low %v263_v20, %v263_v20  ;;  %v230_v28 = vcombine.high %v222_v19, %v222_v19  ;;  %v205_v31 = vcombine.high %v197_v29, %v197_v29  ;;  %v334_v32 = vcombine.high %v326_v24, %v326_v24  ;;  %s608_s5 = sshll.u32 %s186_s29, 4  ;;  %s1094_s5 = int_to_ptr.vmem [resolvable:$true] %s608_s5 }
  0x42   : > { %212 = vst.msk [vmem:[#allocation2 + $0x10] sm:$0x3] %vm211_vm0, %v204_v30  ;;  %v299_v33 = vcombine.low %v291_v17, %v291_v17  ;;  %v359_v34 = vrot.slane %v352_v25, %v1017_v5  ;;  %v333_v38 = vrot.slane %v319_v35, %v1017_v5  ;;  %v385_v39 = vcombine.high %v383_v36, %v383_v36 }
  0x43   : > { %210 = vst [vmem:[#allocation2 + $0x8] sm:$0x3] %v205_v31  ;;  %v392_v41 = vrot.slane %v383_v36, %v1017_v5  ;;  %v366_v42 = vrot.slane %v350_v22, %v1017_v5  ;;  %v419_v43 = vcombine.low %v417_v40, %v417_v40  ;;  %v433_v47 = vrot.slane %v417_v40, %v1017_v5 }
  0x44   : > { %305 = vrot.lane.b32.xlu1 %v300_v16, %s878_s4  ;;  %303 = vrot.lane.b32.xlu0 %v291_v17, %s878_s4  ;;  %v367_v37 = vcombine.high %v359_v34, %v359_v34  ;;  %v399_v44 = vrot.slane %v385_v39, %v1017_v5  ;;  %v460_v52 = vrot.slane %v451_v49, %v1017_v5  ;;  %vm315_vm4 = vcmask 261126  }
  0x45   : > { %v426_v45 = vrot.slane %v419_v43, %v1017_v5  ;;  %v435_v48 = vcombine.low %v433_v47, %v433_v47  ;;  %v400_v51 = vcombine.low %v392_v41, %v392_v41  ;;  %v453_v55 = vcombine.high %v451_v49, %v451_v49 }
  0x46   : > { %v401_v46 = vcombine.low %v399_v44, %v399_v44  ;;  %v468_v53 = vcombine.high %v460_v52, %v460_v52  ;;  %vm307_vm5 = vcmask 900096   ;;  %vm272_vm6 = vcmask 1031168  }
  0x47   : > { %v434_v54 = vcombine.low %v426_v45, %v426_v45  ;;  %v467_v56 = vrot.slane %v453_v55, %v1017_v5  ;;  %vm280_vm7 = vcmask 259076   ;;  %vm237_vm8 = vcmask 1039360  }
  0x48   : > { %266 = vrot.lane.b32.xlu1 %v264_v18, %s876_s22  ;;  %231 = vrot.lane.b32.xlu0 %v222_v19, %s877_s30  ;;  %vm341_vm9 = vcmask 891904   ;;  %vm374_vm10 = vcmask 883712   ;;  %vm408_vm11 = vcmask 752640   ;;  %vm442_vm12 = vcmask 744448  }
  0x49   : > { %vm475_vm13 = vcmask 736256   ;;  %vm504_vm14 = vcmask 392192   ;;  %vm591_vm15 = vcmask 261120  }
  0x4c   : > { %270 = vrot.lane.b32.xlu1 %v265_v27, %s876_s22  ;;  %233 = vrot.lane.b32.xlu0 %v230_v28, %s877_s30  ;;  %s1092_s30 = scalar_lea.hbm %s1139_s3, %s707_s27 }
  0x50   : > { %337 = vrot.lane.b32.xlu1 %v334_v32, %s880_s6  ;;  %301 = vrot.lane.b32.xlu0 %v299_v33, %s878_s4  ;;  %s806_s4 = scalar_lea.vmem %s1094_s5, 384 }
  0x51   : > { %p807_p6 = scmp.ne.s32.totalorder %s1094_s5, %s806_s4 }
  0x53   : > { %p808_p12 = pnand %p807_p6, %p1147_p11 }
  0x54   : > { %370 = vrot.lane.b32.xlu1 %v367_v37, %s881_s7  ;;  %339 = vrot.lane.b32.xlu0 %v333_v38, %s880_s6 }
  0x55   : > { %p809_p13 = pneg %p808_p12 }
  0x58   : > { %404 = vrot.lane.b32.xlu1 %v392_v41, %s882_s9  ;;  %372 = vrot.lane.b32.xlu0 %v366_v42, %s881_s7 }
  0x5c   : > { %438 = vrot.lane.b32.xlu1 %v426_v45, %s883_s10  ;;  %406 = vrot.lane.b32.xlu0 %v401_v46, %s882_s9 }
  0x60   : > { %335 = vrot.lane.b32.xlu1 %v326_v24, %s880_s6  ;;  %440 = vrot.lane.b32.xlu0 %v435_v48, %s883_s10  ;;  %s887_s6 = smov [#allocation6]  }
  0x64   : > { %402 = vrot.lane.b32.xlu1 %v400_v51, %s882_s9  ;;  %368 = vrot.lane.b32.xlu0 %v359_v34, %s881_s7  ;;  %s810_s7 = sshll.u32 %s887_s6, 4  ;;  %s811_s7 = int_to_ptr.vmem [resolvable:$false] %s810_s7 }
  0x65   : > { %s812_s9 = scalar_lea.vmem %s811_s7, 768  ;;  %p813_p5 = scmp.lt.s32.totalorder %s1094_s5, %s811_s7 }
  0x66   : > { %p814_p10 = scmp.lt.s32.totalorder %s812_s9, %s806_s4 }
  0x68   : > { %471 = vrot.lane.b32.xlu1 %v468_v53, %s885_s11  ;;  %436 = vrot.lane.b32.xlu0 %v434_v54, %s883_s10  ;;  %p815_p2 = por %p814_p10, %p813_p5 }
  0x6a   : > { %p816_p4 = pnand %p815_p2, %p809_p13 }
  0x6c   : > { %469 = vrot.lane.b32.xlu1 %v460_v52, %s885_s11  ;;  %473 = vrot.lane.b32.xlu0 %v467_v56, %s885_s11 }
  0x70   : > { %501 = vperm.xlu0 %766, %v498_v57  }
  0xb2   : > { %v269_v58 = vpop.permute.xlu1 %268  ;;  %v236_v59 = vpop.permute.xlu0 %235 }
  0xb3   : > { %246 = vst.msk [vmem:[#allocation2 + $0x10] sm:$0xc] %vm245_vm3, %v236_v59 }
  0xb6   : > { %v306_v60 = vpop.permute.xlu1 %305  ;;  %v304_v61 = vpop.permute.xlu0 %303 }
  0xb7   : > { %316 = vst.msk [vmem:[#allocation2 + $0x10] sm:$0xc0] %vm315_vm4, %v306_v60  ;;  %v309_v62 = vsel %vm307_vm5, %v304_v61, %v306_v60 }
  0xb8   : > { %314 = vst [vmem:[#allocation2 + $0x8] sm:$0xc0] %v309_v62 }
  0xba   : > { %v267_v63 = vpop.permute.xlu1 %266  ;;  %v232_v0 = vpop.permute.xlu0 %231 }
  0xbb   : > { %v273_v1 = vsel %vm272_vm6, %v267_v63, %v269_v58 }
  0xbc   : > { %278 = vst [vmem:[#allocation2] sm:$0x30] %v273_v1 }
  0xbe   : > { %v271_v2 = vpop.permute.xlu1 %270  ;;  %v234_v3 = vpop.permute.xlu0 %233 }
  0xbf   : > { %v274_v4 = vsel %vm272_vm6, %v269_v58, %v271_v2  ;;  %281 = vst.msk [vmem:[#allocation2 + $0x10] sm:$0x30] %vm280_vm7, %v271_v2  ;;  %v238_v5 = vsel %vm237_vm8, %v232_v0, %v234_v3  ;;  %v239_v6 = vsel %vm237_vm8, %v234_v3, %v236_v59 }
  0xc0   : > { %279 = vst [vmem:[#allocation2 + $0x8] sm:$0x30] %v274_v4  ;;  %243 = vst [vmem:[#allocation2] sm:$0xc] %v238_v5 }
  0xc1   : > { %244 = vst [vmem:[#allocation2 + $0x8] sm:$0xc] %v239_v6 }
  0xc2   : > { %v338_v7 = vpop.permute.xlu1 %337  ;;  %v302_v8 = vpop.permute.xlu0 %301 }
  0xc3   : > { %v308_v9 = vsel %vm307_vm5, %v302_v8, %v304_v61 }
  0xc4   : > { %313 = vst [vmem:[#allocation2] sm:$0xc0] %v308_v9 }
  0xc6   : > { %v371_v10 = vpop.permute.xlu1 %370  ;;  %v340_v11 = vpop.permute.xlu0 %339  ;;  %v491_v12 = vld [vmem:[#allocation2 + $0x10] sm:$0xff] }
  0xc7   : > { %v343_v13 = vsel %vm341_vm9, %v338_v7, %v340_v11  ;;  %349 = vst.msk [vmem:[#allocation2 + $0x28] sm:$0x3] %vm211_vm0, %v340_v11  ;;  %694 = vmatpush3.bf16.msra.mxu1 %v491_v12 }
  0xc8   : > { %v490_v14 = vld [vmem:[#allocation2 + $0x8] sm:$0xff]  ;;  %348 = vst [vmem:[#allocation2 + $0x20] sm:$0x3] %v343_v13  ;;  %695 = vmatprep.subr.bf16.mxu1 %v879_v23 }
  0xc9   : > { %508 = vmatprep.subr.bf16.mxu0 %v490_v14 }
  0xca   : > { %v405_v15 = vpop.permute.xlu1 %404  ;;  %v373_v16 = vpop.permute.xlu0 %372 }
  0xcb   : > { %v376_v17 = vsel %vm374_vm10, %v371_v10, %v373_v16  ;;  %382 = vst.msk [vmem:[#allocation2 + $0x28] sm:$0xc] %vm245_vm3, %v373_v16  ;;  %v489_v18 = vld [vmem:[#allocation2] sm:$0xff] }
  0xcc   : > { %381 = vst [vmem:[#allocation2 + $0x20] sm:$0xc] %v376_v17  ;;  %509 = vmatpush1.bf16.msra.mxu0 %v489_v18 }
  0xce   : > { %v439_v19 = vpop.permute.xlu1 %438  ;;  %v407_v20 = vpop.permute.xlu0 %406 }
  0xcf   : > { %v410_v21 = vsel %vm408_vm11, %v405_v15, %v407_v20  ;;  %416 = vst.msk [vmem:[#allocation2 + $0x28] sm:$0x30] %vm280_vm7, %v407_v20 }
  0xd0   : > { %415 = vst [vmem:[#allocation2 + $0x20] sm:$0x30] %v410_v21 }
  0xd2   : > { %v336_v22 = vpop.permute.xlu1 %335  ;;  %v441_v24 = vpop.permute.xlu0 %440 }
  0xd3   : > { %v342_v25 = vsel %vm341_vm9, %v336_v22, %v338_v7  ;;  %v444_v26 = vsel %vm442_vm12, %v439_v19, %v441_v24  ;;  %450 = vst.msk [vmem:[#allocation2 + $0x28] sm:$0xc0] %vm315_vm4, %v441_v24 }
  0xd4   : > { %347 = vst [vmem:[#allocation2 + $0x18] sm:$0x3] %v342_v25  ;;  %449 = vst [vmem:[#allocation2 + $0x20] sm:$0xc0] %v444_v26 }
  0xd6   : > { %v403_v27 = vpop.permute.xlu1 %402  ;;  %v369_v28 = vpop.permute.xlu0 %368 }
  0xd7   : > { %v409_v29 = vsel %vm408_vm11, %v403_v27, %v405_v15  ;;  %v375_v30 = vsel %vm374_vm10, %v369_v28, %v371_v10 }
  0xd8   : > { %414 = vst [vmem:[#allocation2 + $0x18] sm:$0x30] %v409_v29  ;;  %380 = vst [vmem:[#allocation2 + $0x18] sm:$0xc] %v375_v30 }
  0xda   : > { %v472_v31 = vpop.permute.xlu1 %471  ;;  %v437_v32 = vpop.permute.xlu0 %436  ;;  %v494_v33 = vld [vmem:[#allocation2 + $0x28] sm:$0xff] }
  0xdb   : > { %v443_v34 = vsel %vm442_vm12, %v437_v32, %v439_v19  ;;  %696 = vmatpush3.bf16.msra.mxu1 %v494_v33  ;;  %v493_v35 = vld [vmem:[#allocation2 + $0x20] sm:$0xff] }
  0xdc   : > { %448 = vst [vmem:[#allocation2 + $0x18] sm:$0xc0] %v443_v34  ;;  %510 = vmatprep.subr.bf16.mxu0 %v493_v35  ;;  %697 = vmatprep.subr.bf16.mxu1 %v879_v23  ;;  %v488_v23 = vld [vmem:[%s1137_s1] sm:$0xf] }
  0xde   : > { %v470_v36 = vpop.permute.xlu1 %469  ;;  %v474_v37 = vpop.permute.xlu0 %473 }
  0xdf   : > { %v476_v38 = vsel %vm475_vm13, %v470_v36, %v472_v31  ;;  %v477_v39 = vsel %vm475_vm13, %v472_v31, %v474_v37  ;;  %483 = vst.msk [vmem:[#allocation2 + $0x40] sm:$0x3] %vm211_vm0, %v474_v37 }
  0xe0   : > { %481 = vst [vmem:[#allocation2 + $0x30] sm:$0x3] %v476_v38  ;;  %482 = vst [vmem:[#allocation2 + $0x38] sm:$0x3] %v477_v39 }
  0xe3   : > { %v492_v40 = vld [vmem:[#allocation2 + $0x18] sm:$0xff] }
  0xe4   : > { %511 = vmatpush1.bf16.msra.mxu0 %v492_v40 }
  0xe6   : > { %v497_v41 = vld [vmem:[#allocation2 + $0x40] sm:$0xff] }
  0xe7   : > { %698 = vmatpush3.bf16.msra.mxu1 %v497_v41  ;;  %v496_v42 = vld [vmem:[#allocation2 + $0x38] sm:$0xff]  ;;  %v495_v43 = vld [vmem:[#allocation2 + $0x30] sm:$0xff] }
  0xe8   : > { %512 = vmatprep.subr.bf16.mxu0 %v496_v42 }
  0xe9   : > { %513 = vmatpush1.bf16.msra.mxu0 %v495_v43 }
  0xea   : > { %700 = vmatmul.mubr.msk.bf16.vlgmr.msra.gmra.mrb[0].mxu1 %vm504_vm14, %v488_v23 }
  0xec   : > { %684 = vmatmul.mubr.msk.bf16.vlgmr.msra.gmra.mrb[0].mxu0 %vm504_vm14, %v488_v23 }
  0xef   : > { %v502_v44 = vpop.permute.xlu0 %501 }
 0x1bd   : > { %v583_v45 = vpop.f32.mrb[0].mxu1 }
 0x1be   : > { %v701_v46 = vpop.f32.mrb[1].mxu1  ;;  %v584_v47 = vadd.f32 %v583_v45, %v502_v44 }
 0x1bf   : > { %v542_v48 = vpop.f32.mrb[0].mxu0  ;;  %v586_v49 = vpop.f32.mrb[2].mxu1 }
 0x1c0   : > { %v543_v50 = vadd.f32 %v542_v48, %v502_v44  ;;  %v544_v51 = vpop.f32.mrb[1].mxu0  ;;  %v702_v52 = vpop.f32.mrb[3].mxu1  ;;  %592 = vst.msk [vmem:[%s186_s29 + $0x10] sm:$0xff] %vm591_vm15, %v584_v47 }
 0x1c1   : > { %v545_v53 = vadd.f32 %v544_v51, %v502_v44  ;;  %v546_v54 = vpop.f32.mrb[2].mxu0 }
 0x1c2   : > { %589 = vst [vmem:[%s186_s29] sm:$0xff] %v543_v50  ;;  %v547_v55 = vpop.f32.mrb[3].mxu0 }
 0x1c3   : > { %590 = vst [vmem:[%s186_s29 + $0x8] sm:$0xff] %v545_v53 }
 0x1c4   : > { %819 = shalt.err (!%p816_p4)
}
 0x1c5   : > { %s820_s28 = scalar_lea.hbm %s1092_s30, 384  ;;  %s824_s17 = scalar_lea.hbm %s1139_s3, 768 }
 0x1c6   : > { %p821_p7 = scmp.ne.s32.totalorder %s1092_s30, %s820_s28  ;;  %p825_p0 = scmp.lt.u32.totalorder %s1092_s30, %s1139_s3 }
 0x1c7   : > { %p826_p1 = scmp.lt.u32.totalorder %s824_s17, %s820_s28  ;;  %p828_p6 = scmp.lt.u32.totalorder %s820_s28, %s1092_s30 }
 0x1c8   : > { %p822_p8 = pnand %p821_p7, %p1147_p11 }
 0x1c9   : > { %p827_p3 = por %p826_p1, %p825_p0 }
 0x1ca   : > { %p823_p9 = pneg %p822_p8 }
 0x1cb   : > { %p829_p12 = por %p828_p6, %p827_p3 }
 0x1cd   : > { %p830_p13 = pnand %p829_p12, %p823_p9 }
 0x1cf   : > { %833 = shalt.err (!%p830_p13)
}
 0x1d0   : > { %710 = dma.vmem_to_hbm [thread:$0]  (%p1147_p11), %s1094_s5, 384, %s1092_s30, %s594_s16  }
 0x1d1 PF: > { %s620_s25 = sand.u32 1, %s860_s12   ;;  %p1148_p5 = scmp.ne.s32.totalorder %s1143_s24, 0 }
 0x1d2   : > { %p1149_p10 = scmp.ge.s32.totalorder %s872_s15, 2  ;;  %s621_s26 = scalar_lea.sflag [#allocation5], %s620_s25 }
 0x1d4   : > { %p717_p2 = pnand %p1149_p10, %p1148_p5 }
 0x1d6   : > { %855 = dma.done.wait (!%p717_p2), %s621_s26, 384  }
 0x1d7   : > { %857 = vsyncadd (!%p717_p2), %s621_s26, 4294966912  ;;  %p16_p4 = scmp.ge.s32.totalorder %s933_s18, 4   ;;  %s1150_s12 = smov %s864_s13 }
 0x1d8   : > { %s1151_s13 = smov %s868_s14  ;;  %s1152_s14 = smov %s945_s21 }
 0x1d9   : > { %s1153_s15 = smov %s933_s18  ;;  %18 = sbr.rel (!%p16_p4) target bundleno = 5 (0x5), region = 77 }
 0x1e0   :  { %626 = vsyncpa [#allocation4], 1 }
 0x1e1   :  { %628 = vsyncpa [#allocation4 + $0x1], 1 }
 0x1e2   :  { %629 = vsyncpa [#allocation5], 1 }
 0x1e3   :  { %631 = vsyncpa [#allocation5 + $0x1], 1 }

</bundles_post_ra>
